<compile_context>
chip_gen: v6e
topology: v6e:2x2x1
jax: 0.10.0
libtpu: 0.0.40
codegen_flags: <defaults>
</compile_context>

<pallas_src>
import functools

import jax
import jax.numpy as jnp
from jax.experimental import pallas as pl
from jax.experimental.pallas import tpu as pltpu

DIM_INPUT = 2
DIM_HIDDEN = 10
DIM_OUTPUT = 10

# Row/column offsets of each parameter inside the packed weight buffers.
_O_W1 = 0
_O_B1 = _O_W1 + DIM_INPUT          # 2
_O_W2 = _O_B1 + 1                  # 3
_O_B2 = _O_W2 + DIM_HIDDEN         # 13
_O_W3 = _O_B2 + 1                  # 14
_O_B3 = _O_W3 + DIM_HIDDEN         # 24
_PACK = _O_B3 + 1                  # 25


def _round_up(x, m):
    return ((x + m - 1) // m) * m


def _tpu_config():
    """Best-effort (generation, vmem_capacity_bytes) detection."""
    gen = 0
    try:
        kind = jax.devices()[0].device_kind.lower()
        for g in (7, 6, 5, 4, 3):
            if ("v%d" % g) in kind or ("tpu%d" % g) in kind:
                gen = g
                break
    except Exception:
        pass
    vmem_cap = None
    try:
        vmem_cap = int(pltpu.get_tpu_info().vmem_capacity_bytes)
    except Exception:
        pass
    return gen, vmem_cap


# ----------------------------------------------------------------------------
# Fused AK kernel: representations + covariance for one (TM, TN) output tile.
#   d2  = sum_d (x1[:,d] - x2[:,d])^2                         (direct diff)
#   cov = sum_i exp(d2 * coef_i) * outer(r1[:,i], r2[:,i])    (coef=-0.5/l^2)
#   out = (amplitude * r1) @ r2^T * cov
# ----------------------------------------------------------------------------
def ak_fused_kernel(coefs_ref, amp_ref, x1_ref, x2t_ref, pk_ref, pkt_ref,
                    out_ref, *, num_lengthscales, use_bf16_exp):
    x1 = x1_ref[...]                                   # (TM, D)
    x2t = x2t_ref[...]                                 # (D, TN)

    # Unpack parameters (tiny static slices of the two packed buffers).
    pk = pk_ref[...]                                   # (25, H) standard layout
    w1, b1 = pk[_O_W1:_O_B1], pk[_O_B1:_O_W2]
    w2, b2 = pk[_O_W2:_O_B2], pk[_O_B2:_O_W3]
    w3, b3 = pk[_O_W3:_O_B3], pk[_O_B3:_PACK]
    pkt = pkt_ref[...]                                 # (H, 25) transposed layout
    w1t, b1t = pkt[:, _O_W1:_O_B1], pkt[:, _O_B1:_O_W2]
    w2t, b2t = pkt[:, _O_W2:_O_B2], pkt[:, _O_B2:_O_W3]
    w3t, b3t = pkt[:, _O_W3:_O_B3], pkt[:, _O_B3:_PACK]

    # r1 (TM, C): softmax(tanh(tanh(x W1+b1) W2+b2) W3+b3), then L2-normalize.
    h = jnp.tanh(jnp.dot(x1, w1, preferred_element_type=jnp.float32) + b1)
    h = jnp.tanh(jnp.dot(h, w2, preferred_element_type=jnp.float32) + b2)
    logits = jnp.dot(h, w3, preferred_element_type=jnp.float32) + b3
    m = jnp.max(logits, axis=1, keepdims=True)
    e = jnp.exp(logits - m)
    z = e * (1.0 / jnp.sum(e, axis=1, keepdims=True))
    r1 = z * jax.lax.rsqrt(jnp.sum(z * z, axis=1, keepdims=True))

    # r2^T (C, TN): same NN evaluated in transposed layout (N2 stays on lanes).
    ht = jnp.tanh(jnp.dot(w1t, x2t, preferred_element_type=jnp.float32) + b1t)
    ht = jnp.tanh(jnp.dot(w2t, ht, preferred_element_type=jnp.float32) + b2t)
    logits_t = jnp.dot(w3t, ht, preferred_element_type=jnp.float32) + b3t
    mt = jnp.max(logits_t, axis=0, keepdims=True)
    et = jnp.exp(logits_t - mt)
    zt = et * (1.0 / jnp.sum(et, axis=0, keepdims=True))
    r2t = zt * jax.lax.rsqrt(jnp.sum(zt * zt, axis=0, keepdims=True))

    # Squared Euclidean distance by direct coordinate differences (peeled d=0).
    diff = x1[:, 0:1] - x2t[0:1, :]
    d2 = diff * diff
    for d in range(1, DIM_INPUT):                      # static unroll (D == 2)
        diff = x1[:, d:d + 1] - x2t[d:d + 1, :]
        d2 = d2 + diff * diff

    def _rbf(arg):
        # bf16 exp on bf16-EUP chips (v6e / v7x); f32 accumulation regardless.
        if use_bf16_exp:
            return jnp.exp(arg.astype(jnp.bfloat16)).astype(jnp.float32)
        return jnp.exp(arg)

    # Hot loop: one exp per lengthscale, no divides, no transposes.  Accumulate
    # straight into the output VMEM tile so each unrolled iteration's (TM, TN)
    # temporaries are dead after the store (no spill buildup).
    out_ref[...] = _rbf(d2 * coefs_ref[0, 0]) * (r1[:, 0:1] * r2t[0:1, :])
    for i in range(1, num_lengthscales):               # static unroll
        out_ref[...] += _rbf(d2 * coefs_ref[0, i]) * (r1[:, i:i + 1] *
                                                      r2t[i:i + 1, :])

    # Amplitude folded into the tiny (TM, C) operand instead of the result.
    att = jnp.dot(r1 * amp_ref[0, 0], r2t, preferred_element_type=jnp.float32)
    out_ref[...] = out_ref[...] * att


# ----------------------------------------------------------------------------
# Host-side glue.
# ----------------------------------------------------------------------------
def softplus_f(x):
    return jax.nn.softplus(x) + 1e-06


def inv_softplus_f(y):
    _y = y - 1e-06
    return _y + jnp.log(-jnp.expm1(-_y))


def init_params(key):
    """Deterministic init mimicking torch.nn.Linear default (+-1/sqrt(fan_in))."""
    ks = jax.random.split(key, 6)

    def lin(kw, kb, fan_in, fan_out):
        bound = 1.0 / jnp.sqrt(fan_in)
        w = jax.random.uniform(kw, (fan_in, fan_out), jnp.float32, -bound, bound)
        b = jax.random.uniform(kb, (1, fan_out), jnp.float32, -bound, bound)
        return w, b

    w1, b1 = lin(ks[0], ks[1], DIM_INPUT, DIM_HIDDEN)
    w2, b2 = lin(ks[2], ks[3], DIM_HIDDEN, DIM_HIDDEN)
    w3, b3 = lin(ks[4], ks[5], DIM_HIDDEN, DIM_OUTPUT)
    return dict(w1=w1, b1=b1, w2=w2, b2=b2, w3=w3, b3=b3)


def ak_forward(x1, x2, params, lengthscales, free_amplitude,
               *, tile_m=None, tile_n=None):
    n1 = x1.shape[0]
    n2 = x2.shape[0]
    num_ls = lengthscales.shape[0]

    # ---- generation-aware configuration -----------------------------------
    gen, vmem_cap = _tpu_config()
    use_bf16_exp = gen >= 6                             # bf16-capable EUP
    small_vmem = (gen >= 7) or (vmem_cap is not None and
                                vmem_cap <= 96 * 1024 * 1024)
    if small_vmem:                                      # v7x: 64 MiB per TC
        dflt_m, dflt_n, vmem_limit = 256, 1024, 48 * 1024 * 1024
    elif gen in (5, 6):                                 # 128 MiB VMEM parts
        dflt_m, dflt_n, vmem_limit = 512, 1024, 64 * 1024 * 1024
    else:                                               # unknown: conservative
        dflt_m, dflt_n, vmem_limit = 256, 512, 32 * 1024 * 1024
    tile_m = dflt_m if tile_m is None else tile_m
    tile_n = dflt_n if tile_n is None else tile_n

    # Tile sizes: full-array when small (legal blocks), else aligned tiles.
    tm = n1 if n1 <= tile_m else tile_m                 # tile_m % 8 == 0
    tn = n2 if n2 <= tile_n else tile_n                 # tile_n % 128 == 0

    # v7x has 2 TensorCores/chip: ensure >=2 blocks on a "parallel" axis so
    # both cores get work whenever the problem is big enough to split.
    if gen >= 7 and pl.cdiv(n1, tm) == 1 and pl.cdiv(n2, tn) == 1:
        if n2 >= 256:
            tn = _round_up((n2 + 1) // 2, 128)
        elif n1 >= 16:
            tm = _round_up((n1 + 1) // 2, 8)
    grid = (pl.cdiv(n1, tm), pl.cdiv(n2, tn))

    # ---- scalar / operand prep on host -------------------------------------
    amplitude = softplus_f(free_amplitude).astype(jnp.float32).reshape(1, 1)
    ls = lengthscales.astype(jnp.float32)
    coefs = (-0.5 / (ls * ls)).reshape(1, num_ls)       # coef_i = -0.5 / l_i^2

    w1, b1 = params["w1"], params["b1"]
    w2, b2 = params["w2"], params["b2"]
    w3, b3 = params["w3"], params["b3"]
    # Packed parameter buffers: (25, H) standard layout, (H, 25) transposed.
    pk = jnp.concatenate([w1, b1, w2, b2, w3, b3], axis=0).astype(jnp.float32)
    pkt = jnp.concatenate([w1.T, b1.T, w2.T, b2.T, w3.T, b3.T],
                          axis=1).astype(jnp.float32)
    x2t = jnp.transpose(x2).astype(jnp.float32)         # (D, N2)
    x1 = x1.astype(jnp.float32)

    smem_full = pl.BlockSpec(memory_space=pltpu.MemorySpace.SMEM)
    vmem_full = pl.BlockSpec(memory_space=pltpu.MemorySpace.VMEM)

    cost = pl.CostEstimate(
        flops=int((4 * num_ls + 2 * DIM_OUTPUT + 12) * n1 * n2),
        transcendentals=int(num_ls * n1 * n2),
        bytes_accessed=int(4 * (n1 * n2 + (n1 + n2) * DIM_INPUT
                                + 2 * _PACK * DIM_HIDDEN)),
    )

    kernel = functools.partial(ak_fused_kernel, num_lengthscales=num_ls,
                               use_bf16_exp=use_bf16_exp)
    return pl.pallas_call(
        kernel,
        out_shape=jax.ShapeDtypeStruct((n1, n2), jnp.float32),
        grid=grid,
        in_specs=[
            smem_full,                                            # coefs
            smem_full,                                            # amplitude
            pl.BlockSpec((tm, DIM_INPUT), lambda i, j: (i, 0)),   # x1 tile
            pl.BlockSpec((DIM_INPUT, tn), lambda i, j: (0, j)),   # x2^T tile
            vmem_full,                                            # packed std
            vmem_full,                                            # packed ^T
        ],
        out_specs=pl.BlockSpec((tm, tn), lambda i, j: (i, j)),
        compiler_params=pltpu.CompilerParams(
            dimension_semantics=("parallel", "parallel"),
            vmem_limit_bytes=vmem_limit,
        ),
        cost_estimate=cost,
    )(coefs, amplitude, x1, x2t, pk, pkt)


# ----------------------------------------------------------------------------
# Pure-JAX reference (same math, float32) for a silent sanity check.
# ----------------------------------------------------------------------------
def _reference(x1, x2, params, lengthscales, free_amplitude):
    def repr_fn(x):
        h1 = jnp.tanh(x @ params["w1"] + params["b1"])
        h2 = jnp.tanh(h1 @ params["w2"] + params["b2"])
        z = jax.nn.softmax(h2 @ params["w3"] + params["b3"], axis=1)
        return z / jnp.linalg.norm(z, axis=1, keepdims=True)

    amplitude = softplus_f(free_amplitude)
    r1, r2 = repr_fn(x1), repr_fn(x2)
    d2 = jnp.sum((x1[:, None, :] - x2[None, :, :]) ** 2, axis=-1)
    cov = jnp.zeros((x1.shape[0], x2.shape[0]), jnp.float32)
    for i in range(lengthscales.shape[0]):
        cov = cov + jnp.exp(-0.5 * d2 / lengthscales[i] ** 2) * jnp.outer(
            r1[:, i], r2[:, i])
    return amplitude * (r1 @ r2.T) * cov


if __name__ == "__main__":
    key = jax.random.PRNGKey(0)
    k_params, k_x1, k_x2 = jax.random.split(key, 3)

    N1, N2 = 8, 16
    x1 = jax.random.normal(k_x1, (N1, DIM_INPUT), jnp.float32)
    x2 = jax.random.normal(k_x2, (N2, DIM_INPUT), jnp.float32)

    params = init_params(k_params)

    # AK(amplitude=1.0, lengthscales=linspace(0.5, 2.0, 10), ...)
    amplitude_init = jnp.float32(1.0)
    free_amplitude = inv_softplus_f(amplitude_init)      # parameter storage
    lengthscales = jnp.linspace(0.5, 2.0, DIM_OUTPUT).astype(jnp.float32)

    cov = ak_forward(x1, x2, params, lengthscales, free_amplitude)
    jax.block_until_ready(cov)
    assert cov.shape == (N1, N2)

    ref = _reference(x1, x2, params, lengthscales, free_amplitude)
    gen, _ = _tpu_config()
    # bf16 exp (v6e/v7x) needs a slightly looser tolerance than pure f32.
    rtol, atol = (3e-2, 2e-3) if gen >= 6 else (5e-3, 5e-4)
    assert jnp.allclose(cov, ref, rtol=rtol, atol=atol), float(
        jnp.max(jnp.abs(cov - ref)))

    print("KERNEL_OK")
</pallas_src>

<mosaic_0001>
module attributes {stable_mosaic.version = 11 : i64} {
  func.func @ak_fused_kernel(%arg0: i32, %arg1: i32, %arg2: memref<1x10xf32, #tpu.memory_space<smem>>, %arg3: memref<1x1xf32, #tpu.memory_space<smem>>, %arg4: memref<8x2xf32, #tpu.memory_space<vmem>>, %arg5: memref<2x16xf32, #tpu.memory_space<vmem>>, %arg6: memref<25x10xf32, #tpu.memory_space<vmem>>, %arg7: memref<10x25xf32, #tpu.memory_space<vmem>>, %arg8: memref<8x16xf32, #tpu.memory_space<vmem>>) attributes {dimension_semantics = [#tpu.dimension_semantics<parallel>, #tpu.dimension_semantics<parallel>], iteration_bounds = array<i64: 1, 1>, scalar_prefetch = 0 : i64, scratch_operands = 0 : i64, tpu.core_type = #tpu.core_type<tc>, window_params = [{transform_indices = @transform_0, window_bounds = array<i64: 1, 10>}, {transform_indices = @transform_1, window_bounds = array<i64: 1, 1>}, {transform_indices = @transform_2, window_bounds = array<i64: 8, 2>}, {transform_indices = @transform_3, window_bounds = array<i64: 2, 16>}, {pipeline_mode = #tpu.pipeline_mode<synchronous>, transform_indices = @transform_4, window_bounds = array<i64: 25, 10>}, {pipeline_mode = #tpu.pipeline_mode<synchronous>, transform_indices = @transform_5, window_bounds = array<i64: 10, 25>}, {transform_indices = @transform_6, window_bounds = array<i64: 8, 16>}]} {
    %c0 = arith.constant 0 : index
    %c0_0 = arith.constant 0 : index
    %0 = vector.load %arg4[%c0, %c0_0] : memref<8x2xf32, #tpu.memory_space<vmem>>, vector<8x2xf32>
    %c0_1 = arith.constant 0 : index
    %c0_2 = arith.constant 0 : index
    %1 = vector.load %arg5[%c0_1, %c0_2] : memref<2x16xf32, #tpu.memory_space<vmem>>, vector<2x16xf32>
    %c0_3 = arith.constant 0 : index
    %c0_4 = arith.constant 0 : index
    %2 = vector.load %arg6[%c0_3, %c0_4] : memref<25x10xf32, #tpu.memory_space<vmem>>, vector<25x10xf32>
    %3 = vector.extract_strided_slice %2 {offsets = [0, 0], sizes = [2, 10], strides = [1, 1]} : vector<25x10xf32> to vector<2x10xf32>
    %4 = vector.extract_strided_slice %2 {offsets = [2, 0], sizes = [1, 10], strides = [1, 1]} : vector<25x10xf32> to vector<1x10xf32>
    %5 = vector.extract_strided_slice %2 {offsets = [3, 0], sizes = [10, 10], strides = [1, 1]} : vector<25x10xf32> to vector<10x10xf32>
    %6 = vector.extract_strided_slice %2 {offsets = [13, 0], sizes = [1, 10], strides = [1, 1]} : vector<25x10xf32> to vector<1x10xf32>
    %7 = vector.extract_strided_slice %2 {offsets = [14, 0], sizes = [10, 10], strides = [1, 1]} : vector<25x10xf32> to vector<10x10xf32>
    %8 = vector.extract_strided_slice %2 {offsets = [24, 0], sizes = [1, 10], strides = [1, 1]} : vector<25x10xf32> to vector<1x10xf32>
    %c0_5 = arith.constant 0 : index
    %c0_6 = arith.constant 0 : index
    %9 = vector.load %arg7[%c0_5, %c0_6] : memref<10x25xf32, #tpu.memory_space<vmem>>, vector<10x25xf32>
    %10 = vector.extract_strided_slice %9 {offsets = [0, 0], sizes = [10, 2], strides = [1, 1]} : vector<10x25xf32> to vector<10x2xf32>
    %11 = vector.extract_strided_slice %9 {offsets = [0, 2], sizes = [10, 1], strides = [1, 1]} : vector<10x25xf32> to vector<10x1xf32>
    %12 = vector.extract_strided_slice %9 {offsets = [0, 3], sizes = [10, 10], strides = [1, 1]} : vector<10x25xf32> to vector<10x10xf32>
    %13 = vector.extract_strided_slice %9 {offsets = [0, 13], sizes = [10, 1], strides = [1, 1]} : vector<10x25xf32> to vector<10x1xf32>
    %14 = vector.extract_strided_slice %9 {offsets = [0, 14], sizes = [10, 10], strides = [1, 1]} : vector<10x25xf32> to vector<10x10xf32>
    %15 = vector.extract_strided_slice %9 {offsets = [0, 24], sizes = [10, 1], strides = [1, 1]} : vector<10x25xf32> to vector<10x1xf32>
    %cst = arith.constant dense<0.000000e+00> : vector<8x10xf32>
    %16 = tpu.matmul %0, %3, %cst {dimension_numbers = #tpu.dot_dimension_numbers<[1], [0], [0], [1], [0, 0, 1, 1], [], []>} : vector<8x2xf32>, vector<2x10xf32>, vector<8x10xf32> -> vector<8x10xf32>
    %17 = vector.broadcast %4 : vector<1x10xf32> to vector<8x10xf32>
    %18 = arith.addf %16, %17 : vector<8x10xf32>
    %19 = math.tanh %18 : vector<8x10xf32>
    %cst_7 = arith.constant dense<0.000000e+00> : vector<8x10xf32>
    %20 = tpu.matmul %19, %5, %cst_7 {dimension_numbers = #tpu.dot_dimension_numbers<[1], [0], [0], [1], [0, 0, 1, 1], [], []>} : vector<8x10xf32>, vector<10x10xf32>, vector<8x10xf32> -> vector<8x10xf32>
    %21 = vector.broadcast %6 : vector<1x10xf32> to vector<8x10xf32>
    %22 = arith.addf %20, %21 : vector<8x10xf32>
    %23 = math.tanh %22 : vector<8x10xf32>
    %cst_8 = arith.constant dense<0.000000e+00> : vector<8x10xf32>
    %24 = tpu.matmul %23, %7, %cst_8 {dimension_numbers = #tpu.dot_dimension_numbers<[1], [0], [0], [1], [0, 0, 1, 1], [], []>} : vector<8x10xf32>, vector<10x10xf32>, vector<8x10xf32> -> vector<8x10xf32>
    %25 = vector.broadcast %8 : vector<1x10xf32> to vector<8x10xf32>
    %26 = arith.addf %24, %25 : vector<8x10xf32>
    %cst_9 = arith.constant dense<0xFF800000> : vector<8xf32>
    %27 = vector.multi_reduction <maximumf>, %26, %cst_9 [1] : vector<8x10xf32> to vector<8xf32>
    %28 = vector.shape_cast %27 : vector<8xf32> to vector<8x1xf32>
    %29 = vector.broadcast %28 : vector<8x1xf32> to vector<8x10xf32>
    %30 = arith.subf %26, %29 : vector<8x10xf32>
    %31 = math.exp %30 : vector<8x10xf32>
    %cst_10 = arith.constant dense<0.000000e+00> : vector<8xf32>
    %32 = vector.multi_reduction <add>, %31, %cst_10 [1] : vector<8x10xf32> to vector<8xf32>
    %33 = vector.shape_cast %32 : vector<8xf32> to vector<8x1xf32>
    %cst_11 = arith.constant 1.000000e+00 : f32
    %34 = vector.broadcast %cst_11 : f32 to vector<8x1xf32>
    %35 = arith.divf %34, %33 : vector<8x1xf32>
    %36 = vector.broadcast %35 : vector<8x1xf32> to vector<8x10xf32>
    %37 = arith.mulf %31, %36 : vector<8x10xf32>
    %38 = arith.mulf %37, %37 : vector<8x10xf32>
    %cst_12 = arith.constant dense<0.000000e+00> : vector<8xf32>
    %39 = vector.multi_reduction <add>, %38, %cst_12 [1] : vector<8x10xf32> to vector<8xf32>
    %40 = vector.shape_cast %39 : vector<8xf32> to vector<8x1xf32>
    %41 = math.rsqrt %40 : vector<8x1xf32>
    %42 = vector.broadcast %41 : vector<8x1xf32> to vector<8x10xf32>
    %43 = arith.mulf %37, %42 : vector<8x10xf32>
    %cst_13 = arith.constant dense<0.000000e+00> : vector<10x16xf32>
    %44 = tpu.matmul %10, %1, %cst_13 {dimension_numbers = #tpu.dot_dimension_numbers<[1], [0], [0], [1], [0, 0, 1, 1], [], []>} : vector<10x2xf32>, vector<2x16xf32>, vector<10x16xf32> -> vector<10x16xf32>
    %45 = vector.broadcast %11 : vector<10x1xf32> to vector<10x16xf32>
    %46 = arith.addf %44, %45 : vector<10x16xf32>
    %47 = math.tanh %46 : vector<10x16xf32>
    %cst_14 = arith.constant dense<0.000000e+00> : vector<10x16xf32>
    %48 = tpu.matmul %12, %47, %cst_14 {dimension_numbers = #tpu.dot_dimension_numbers<[1], [0], [0], [1], [0, 0, 1, 1], [], []>} : vector<10x10xf32>, vector<10x16xf32>, vector<10x16xf32> -> vector<10x16xf32>
    %49 = vector.broadcast %13 : vector<10x1xf32> to vector<10x16xf32>
    %50 = arith.addf %48, %49 : vector<10x16xf32>
    %51 = math.tanh %50 : vector<10x16xf32>
    %cst_15 = arith.constant dense<0.000000e+00> : vector<10x16xf32>
    %52 = tpu.matmul %14, %51, %cst_15 {dimension_numbers = #tpu.dot_dimension_numbers<[1], [0], [0], [1], [0, 0, 1, 1], [], []>} : vector<10x10xf32>, vector<10x16xf32>, vector<10x16xf32> -> vector<10x16xf32>
    %53 = vector.broadcast %15 : vector<10x1xf32> to vector<10x16xf32>
    %54 = arith.addf %52, %53 : vector<10x16xf32>
    %cst_16 = arith.constant dense<0xFF800000> : vector<16xf32>
    %55 = vector.multi_reduction <maximumf>, %54, %cst_16 [0] : vector<10x16xf32> to vector<16xf32>
    %56 = vector.shape_cast %55 : vector<16xf32> to vector<1x16xf32>
    %57 = vector.broadcast %56 : vector<1x16xf32> to vector<10x16xf32>
    %58 = arith.subf %54, %57 : vector<10x16xf32>
    %59 = math.exp %58 : vector<10x16xf32>
    %cst_17 = arith.constant dense<0.000000e+00> : vector<16xf32>
    %60 = vector.multi_reduction <add>, %59, %cst_17 [0] : vector<10x16xf32> to vector<16xf32>
    %61 = vector.shape_cast %60 : vector<16xf32> to vector<1x16xf32>
    %cst_18 = arith.constant 1.000000e+00 : f32
    %62 = vector.broadcast %cst_18 : f32 to vector<1x16xf32>
    %63 = arith.divf %62, %61 : vector<1x16xf32>
    %64 = vector.broadcast %63 : vector<1x16xf32> to vector<10x16xf32>
    %65 = arith.mulf %59, %64 : vector<10x16xf32>
    %66 = arith.mulf %65, %65 : vector<10x16xf32>
    %cst_19 = arith.constant dense<0.000000e+00> : vector<16xf32>
    %67 = vector.multi_reduction <add>, %66, %cst_19 [0] : vector<10x16xf32> to vector<16xf32>
    %68 = vector.shape_cast %67 : vector<16xf32> to vector<1x16xf32>
    %69 = math.rsqrt %68 : vector<1x16xf32>
    %70 = vector.broadcast %69 : vector<1x16xf32> to vector<10x16xf32>
    %71 = arith.mulf %65, %70 : vector<10x16xf32>
    %72 = vector.extract_strided_slice %0 {offsets = [0, 0], sizes = [8, 1], strides = [1, 1]} : vector<8x2xf32> to vector<8x1xf32>
    %73 = vector.extract_strided_slice %1 {offsets = [0, 0], sizes = [1, 16], strides = [1, 1]} : vector<2x16xf32> to vector<1x16xf32>
    %74 = vector.broadcast %72 : vector<8x1xf32> to vector<8x16xf32>
    %75 = vector.broadcast %73 : vector<1x16xf32> to vector<8x16xf32>
    %76 = arith.subf %74, %75 : vector<8x16xf32>
    %77 = arith.mulf %76, %76 : vector<8x16xf32>
    %78 = vector.extract_strided_slice %0 {offsets = [0, 1], sizes = [8, 1], strides = [1, 1]} : vector<8x2xf32> to vector<8x1xf32>
    %79 = vector.extract_strided_slice %1 {offsets = [1, 0], sizes = [1, 16], strides = [1, 1]} : vector<2x16xf32> to vector<1x16xf32>
    %80 = vector.broadcast %78 : vector<8x1xf32> to vector<8x16xf32>
    %81 = vector.broadcast %79 : vector<1x16xf32> to vector<8x16xf32>
    %82 = arith.subf %80, %81 : vector<8x16xf32>
    %83 = arith.mulf %82, %82 : vector<8x16xf32>
    %84 = arith.addf %77, %83 : vector<8x16xf32>
    %c0_20 = arith.constant 0 : index
    %c0_21 = arith.constant 0 : index
    %85 = memref.load %arg2[%c0_20, %c0_21] : memref<1x10xf32, #tpu.memory_space<smem>>
    %86 = vector.broadcast %85 : f32 to vector<8x16xf32>
    %87 = arith.mulf %84, %86 : vector<8x16xf32>
    %88 = math.exp %87 : vector<8x16xf32>
    %89 = vector.extract_strided_slice %43 {offsets = [0, 0], sizes = [8, 1], strides = [1, 1]} : vector<8x10xf32> to vector<8x1xf32>
    %90 = vector.extract_strided_slice %71 {offsets = [0, 0], sizes = [1, 16], strides = [1, 1]} : vector<10x16xf32> to vector<1x16xf32>
    %91 = vector.broadcast %89 : vector<8x1xf32> to vector<8x16xf32>
    %92 = vector.broadcast %90 : vector<1x16xf32> to vector<8x16xf32>
    %93 = arith.mulf %91, %92 : vector<8x16xf32>
    %94 = arith.mulf %88, %93 : vector<8x16xf32>
    %c0_22 = arith.constant 0 : index
    %c0_23 = arith.constant 0 : index
    %95 = vector.load %arg8[%c0_22, %c0_23] : memref<8x16xf32, #tpu.memory_space<vmem>>, vector<8x16xf32>
    tpu.vector_store %arg8[%c0_22, %c0_23], %94 {strides = array<i32>} : memref<8x16xf32, #tpu.memory_space<vmem>>, vector<8x16xf32>,
    %c0_24 = arith.constant 0 : index
    %c0_25 = arith.constant 0 : index
    %96 = vector.load %arg8[%c0_24, %c0_25] : memref<8x16xf32, #tpu.memory_space<vmem>>, vector<8x16xf32>
    %c0_26 = arith.constant 0 : index
    %c1 = arith.constant 1 : index
    %97 = memref.load %arg2[%c0_26, %c1] : memref<1x10xf32, #tpu.memory_space<smem>>
    %98 = vector.broadcast %97 : f32 to vector<8x16xf32>
    %99 = arith.mulf %84, %98 : vector<8x16xf32>
    %100 = math.exp %99 : vector<8x16xf32>
    %101 = vector.extract_strided_slice %43 {offsets = [0, 1], sizes = [8, 1], strides = [1, 1]} : vector<8x10xf32> to vector<8x1xf32>
    %102 = vector.extract_strided_slice %71 {offsets = [1, 0], sizes = [1, 16], strides = [1, 1]} : vector<10x16xf32> to vector<1x16xf32>
    %103 = vector.broadcast %101 : vector<8x1xf32> to vector<8x16xf32>
    %104 = vector.broadcast %102 : vector<1x16xf32> to vector<8x16xf32>
    %105 = arith.mulf %103, %104 : vector<8x16xf32>
    %106 = arith.mulf %100, %105 : vector<8x16xf32>
    %107 = arith.addf %96, %106 : vector<8x16xf32>
    %c0_27 = arith.constant 0 : index
    %c0_28 = arith.constant 0 : index
    %108 = vector.load %arg8[%c0_27, %c0_28] : memref<8x16xf32, #tpu.memory_space<vmem>>, vector<8x16xf32>
    tpu.vector_store %arg8[%c0_27, %c0_28], %107 {strides = array<i32>} : memref<8x16xf32, #tpu.memory_space<vmem>>, vector<8x16xf32>,
    %c0_29 = arith.constant 0 : index
    %c0_30 = arith.constant 0 : index
    %109 = vector.load %arg8[%c0_29, %c0_30] : memref<8x16xf32, #tpu.memory_space<vmem>>, vector<8x16xf32>
    %c0_31 = arith.constant 0 : index
    %c2 = arith.constant 2 : index
    %110 = memref.load %arg2[%c0_31, %c2] : memref<1x10xf32, #tpu.memory_space<smem>>
    %111 = vector.broadcast %110 : f32 to vector<8x16xf32>
    %112 = arith.mulf %84, %111 : vector<8x16xf32>
    %113 = math.exp %112 : vector<8x16xf32>
    %114 = vector.extract_strided_slice %43 {offsets = [0, 2], sizes = [8, 1], strides = [1, 1]} : vector<8x10xf32> to vector<8x1xf32>
    %115 = vector.extract_strided_slice %71 {offsets = [2, 0], sizes = [1, 16], strides = [1, 1]} : vector<10x16xf32> to vector<1x16xf32>
    %116 = vector.broadcast %114 : vector<8x1xf32> to vector<8x16xf32>
    %117 = vector.broadcast %115 : vector<1x16xf32> to vector<8x16xf32>
    %118 = arith.mulf %116, %117 : vector<8x16xf32>
    %119 = arith.mulf %113, %118 : vector<8x16xf32>
    %120 = arith.addf %109, %119 : vector<8x16xf32>
    %c0_32 = arith.constant 0 : index
    %c0_33 = arith.constant 0 : index
    %121 = vector.load %arg8[%c0_32, %c0_33] : memref<8x16xf32, #tpu.memory_space<vmem>>, vector<8x16xf32>
    tpu.vector_store %arg8[%c0_32, %c0_33], %120 {strides = array<i32>} : memref<8x16xf32, #tpu.memory_space<vmem>>, vector<8x16xf32>,
    %c0_34 = arith.constant 0 : index
    %c0_35 = arith.constant 0 : index
    %122 = vector.load %arg8[%c0_34, %c0_35] : memref<8x16xf32, #tpu.memory_space<vmem>>, vector<8x16xf32>
    %c0_36 = arith.constant 0 : index
    %c3 = arith.constant 3 : index
    %123 = memref.load %arg2[%c0_36, %c3] : memref<1x10xf32, #tpu.memory_space<smem>>
    %124 = vector.broadcast %123 : f32 to vector<8x16xf32>
    %125 = arith.mulf %84, %124 : vector<8x16xf32>
    %126 = math.exp %125 : vector<8x16xf32>
    %127 = vector.extract_strided_slice %43 {offsets = [0, 3], sizes = [8, 1], strides = [1, 1]} : vector<8x10xf32> to vector<8x1xf32>
    %128 = vector.extract_strided_slice %71 {offsets = [3, 0], sizes = [1, 16], strides = [1, 1]} : vector<10x16xf32> to vector<1x16xf32>
    %129 = vector.broadcast %127 : vector<8x1xf32> to vector<8x16xf32>
    %130 = vector.broadcast %128 : vector<1x16xf32> to vector<8x16xf32>
    %131 = arith.mulf %129, %130 : vector<8x16xf32>
    %132 = arith.mulf %126, %131 : vector<8x16xf32>
    %133 = arith.addf %122, %132 : vector<8x16xf32>
    %c0_37 = arith.constant 0 : index
    %c0_38 = arith.constant 0 : index
    %134 = vector.load %arg8[%c0_37, %c0_38] : memref<8x16xf32, #tpu.memory_space<vmem>>, vector<8x16xf32>
    tpu.vector_store %arg8[%c0_37, %c0_38], %133 {strides = array<i32>} : memref<8x16xf32, #tpu.memory_space<vmem>>, vector<8x16xf32>,
    %c0_39 = arith.constant 0 : index
    %c0_40 = arith.constant 0 : index
    %135 = vector.load %arg8[%c0_39, %c0_40] : memref<8x16xf32, #tpu.memory_space<vmem>>, vector<8x16xf32>
    %c0_41 = arith.constant 0 : index
    %c4 = arith.constant 4 : index
    %136 = memref.load %arg2[%c0_41, %c4] : memref<1x10xf32, #tpu.memory_space<smem>>
    %137 = vector.broadcast %136 : f32 to vector<8x16xf32>
    %138 = arith.mulf %84, %137 : vector<8x16xf32>
    %139 = math.exp %138 : vector<8x16xf32>
    %140 = vector.extract_strided_slice %43 {offsets = [0, 4], sizes = [8, 1], strides = [1, 1]} : vector<8x10xf32> to vector<8x1xf32>
    %141 = vector.extract_strided_slice %71 {offsets = [4, 0], sizes = [1, 16], strides = [1, 1]} : vector<10x16xf32> to vector<1x16xf32>
    %142 = vector.broadcast %140 : vector<8x1xf32> to vector<8x16xf32>
    %143 = vector.broadcast %141 : vector<1x16xf32> to vector<8x16xf32>
    %144 = arith.mulf %142, %143 : vector<8x16xf32>
    %145 = arith.mulf %139, %144 : vector<8x16xf32>
    %146 = arith.addf %135, %145 : vector<8x16xf32>
    %c0_42 = arith.constant 0 : index
    %c0_43 = arith.constant 0 : index
    %147 = vector.load %arg8[%c0_42, %c0_43] : memref<8x16xf32, #tpu.memory_space<vmem>>, vector<8x16xf32>
    tpu.vector_store %arg8[%c0_42, %c0_43], %146 {strides = array<i32>} : memref<8x16xf32, #tpu.memory_space<vmem>>, vector<8x16xf32>,
    %c0_44 = arith.constant 0 : index
    %c0_45 = arith.constant 0 : index
    %148 = vector.load %arg8[%c0_44, %c0_45] : memref<8x16xf32, #tpu.memory_space<vmem>>, vector<8x16xf32>
    %c0_46 = arith.constant 0 : index
    %c5 = arith.constant 5 : index
    %149 = memref.load %arg2[%c0_46, %c5] : memref<1x10xf32, #tpu.memory_space<smem>>
    %150 = vector.broadcast %149 : f32 to vector<8x16xf32>
    %151 = arith.mulf %84, %150 : vector<8x16xf32>
    %152 = math.exp %151 : vector<8x16xf32>
    %153 = vector.extract_strided_slice %43 {offsets = [0, 5], sizes = [8, 1], strides = [1, 1]} : vector<8x10xf32> to vector<8x1xf32>
    %154 = vector.extract_strided_slice %71 {offsets = [5, 0], sizes = [1, 16], strides = [1, 1]} : vector<10x16xf32> to vector<1x16xf32>
    %155 = vector.broadcast %153 : vector<8x1xf32> to vector<8x16xf32>
    %156 = vector.broadcast %154 : vector<1x16xf32> to vector<8x16xf32>
    %157 = arith.mulf %155, %156 : vector<8x16xf32>
    %158 = arith.mulf %152, %157 : vector<8x16xf32>
    %159 = arith.addf %148, %158 : vector<8x16xf32>
    %c0_47 = arith.constant 0 : index
    %c0_48 = arith.constant 0 : index
    %160 = vector.load %arg8[%c0_47, %c0_48] : memref<8x16xf32, #tpu.memory_space<vmem>>, vector<8x16xf32>
    tpu.vector_store %arg8[%c0_47, %c0_48], %159 {strides = array<i32>} : memref<8x16xf32, #tpu.memory_space<vmem>>, vector<8x16xf32>,
    %c0_49 = arith.constant 0 : index
    %c0_50 = arith.constant 0 : index
    %161 = vector.load %arg8[%c0_49, %c0_50] : memref<8x16xf32, #tpu.memory_space<vmem>>, vector<8x16xf32>
    %c0_51 = arith.constant 0 : index
    %c6 = arith.constant 6 : index
    %162 = memref.load %arg2[%c0_51, %c6] : memref<1x10xf32, #tpu.memory_space<smem>>
    %163 = vector.broadcast %162 : f32 to vector<8x16xf32>
    %164 = arith.mulf %84, %163 : vector<8x16xf32>
    %165 = math.exp %164 : vector<8x16xf32>
    %166 = vector.extract_strided_slice %43 {offsets = [0, 6], sizes = [8, 1], strides = [1, 1]} : vector<8x10xf32> to vector<8x1xf32>
    %167 = vector.extract_strided_slice %71 {offsets = [6, 0], sizes = [1, 16], strides = [1, 1]} : vector<10x16xf32> to vector<1x16xf32>
    %168 = vector.broadcast %166 : vector<8x1xf32> to vector<8x16xf32>
    %169 = vector.broadcast %167 : vector<1x16xf32> to vector<8x16xf32>
    %170 = arith.mulf %168, %169 : vector<8x16xf32>
    %171 = arith.mulf %165, %170 : vector<8x16xf32>
    %172 = arith.addf %161, %171 : vector<8x16xf32>
    %c0_52 = arith.constant 0 : index
    %c0_53 = arith.constant 0 : index
    %173 = vector.load %arg8[%c0_52, %c0_53] : memref<8x16xf32, #tpu.memory_space<vmem>>, vector<8x16xf32>
    tpu.vector_store %arg8[%c0_52, %c0_53], %172 {strides = array<i32>} : memref<8x16xf32, #tpu.memory_space<vmem>>, vector<8x16xf32>,
    %c0_54 = arith.constant 0 : index
    %c0_55 = arith.constant 0 : index
    %174 = vector.load %arg8[%c0_54, %c0_55] : memref<8x16xf32, #tpu.memory_space<vmem>>, vector<8x16xf32>
    %c0_56 = arith.constant 0 : index
    %c7 = arith.constant 7 : index
    %175 = memref.load %arg2[%c0_56, %c7] : memref<1x10xf32, #tpu.memory_space<smem>>
    %176 = vector.broadcast %175 : f32 to vector<8x16xf32>
    %177 = arith.mulf %84, %176 : vector<8x16xf32>
    %178 = math.exp %177 : vector<8x16xf32>
    %179 = vector.extract_strided_slice %43 {offsets = [0, 7], sizes = [8, 1], strides = [1, 1]} : vector<8x10xf32> to vector<8x1xf32>
    %180 = vector.extract_strided_slice %71 {offsets = [7, 0], sizes = [1, 16], strides = [1, 1]} : vector<10x16xf32> to vector<1x16xf32>
    %181 = vector.broadcast %179 : vector<8x1xf32> to vector<8x16xf32>
    %182 = vector.broadcast %180 : vector<1x16xf32> to vector<8x16xf32>
    %183 = arith.mulf %181, %182 : vector<8x16xf32>
    %184 = arith.mulf %178, %183 : vector<8x16xf32>
    %185 = arith.addf %174, %184 : vector<8x16xf32>
    %c0_57 = arith.constant 0 : index
    %c0_58 = arith.constant 0 : index
    %186 = vector.load %arg8[%c0_57, %c0_58] : memref<8x16xf32, #tpu.memory_space<vmem>>, vector<8x16xf32>
    tpu.vector_store %arg8[%c0_57, %c0_58], %185 {strides = array<i32>} : memref<8x16xf32, #tpu.memory_space<vmem>>, vector<8x16xf32>,
    %c0_59 = arith.constant 0 : index
    %c0_60 = arith.constant 0 : index
    %187 = vector.load %arg8[%c0_59, %c0_60] : memref<8x16xf32, #tpu.memory_space<vmem>>, vector<8x16xf32>
    %c0_61 = arith.constant 0 : index
    %c8 = arith.constant 8 : index
    %188 = memref.load %arg2[%c0_61, %c8] : memref<1x10xf32, #tpu.memory_space<smem>>
    %189 = vector.broadcast %188 : f32 to vector<8x16xf32>
    %190 = arith.mulf %84, %189 : vector<8x16xf32>
    %191 = math.exp %190 : vector<8x16xf32>
    %192 = vector.extract_strided_slice %43 {offsets = [0, 8], sizes = [8, 1], strides = [1, 1]} : vector<8x10xf32> to vector<8x1xf32>
    %193 = vector.extract_strided_slice %71 {offsets = [8, 0], sizes = [1, 16], strides = [1, 1]} : vector<10x16xf32> to vector<1x16xf32>
    %194 = vector.broadcast %192 : vector<8x1xf32> to vector<8x16xf32>
    %195 = vector.broadcast %193 : vector<1x16xf32> to vector<8x16xf32>
    %196 = arith.mulf %194, %195 : vector<8x16xf32>
    %197 = arith.mulf %191, %196 : vector<8x16xf32>
    %198 = arith.addf %187, %197 : vector<8x16xf32>
    %c0_62 = arith.constant 0 : index
    %c0_63 = arith.constant 0 : index
    %199 = vector.load %arg8[%c0_62, %c0_63] : memref<8x16xf32, #tpu.memory_space<vmem>>, vector<8x16xf32>
    tpu.vector_store %arg8[%c0_62, %c0_63], %198 {strides = array<i32>} : memref<8x16xf32, #tpu.memory_space<vmem>>, vector<8x16xf32>,
    %c0_64 = arith.constant 0 : index
    %c0_65 = arith.constant 0 : index
    %200 = vector.load %arg8[%c0_64, %c0_65] : memref<8x16xf32, #tpu.memory_space<vmem>>, vector<8x16xf32>
    %c0_66 = arith.constant 0 : index
    %c9 = arith.constant 9 : index
    %201 = memref.load %arg2[%c0_66, %c9] : memref<1x10xf32, #tpu.memory_space<smem>>
    %202 = vector.broadcast %201 : f32 to vector<8x16xf32>
    %203 = arith.mulf %84, %202 : vector<8x16xf32>
    %204 = math.exp %203 : vector<8x16xf32>
    %205 = vector.extract_strided_slice %43 {offsets = [0, 9], sizes = [8, 1], strides = [1, 1]} : vector<8x10xf32> to vector<8x1xf32>
    %206 = vector.extract_strided_slice %71 {offsets = [9, 0], sizes = [1, 16], strides = [1, 1]} : vector<10x16xf32> to vector<1x16xf32>
    %207 = vector.broadcast %205 : vector<8x1xf32> to vector<8x16xf32>
    %208 = vector.broadcast %206 : vector<1x16xf32> to vector<8x16xf32>
    %209 = arith.mulf %207, %208 : vector<8x16xf32>
    %210 = arith.mulf %204, %209 : vector<8x16xf32>
    %211 = arith.addf %200, %210 : vector<8x16xf32>
    %c0_67 = arith.constant 0 : index
    %c0_68 = arith.constant 0 : index
    %212 = vector.load %arg8[%c0_67, %c0_68] : memref<8x16xf32, #tpu.memory_space<vmem>>, vector<8x16xf32>
    tpu.vector_store %arg8[%c0_67, %c0_68], %211 {strides = array<i32>} : memref<8x16xf32, #tpu.memory_space<vmem>>, vector<8x16xf32>,
    %c0_69 = arith.constant 0 : index
    %c0_70 = arith.constant 0 : index
    %213 = memref.load %arg3[%c0_69, %c0_70] : memref<1x1xf32, #tpu.memory_space<smem>>
    %214 = vector.broadcast %213 : f32 to vector<8x10xf32>
    %215 = arith.mulf %43, %214 : vector<8x10xf32>
    %cst_71 = arith.constant dense<0.000000e+00> : vector<8x16xf32>
    %216 = tpu.matmul %215, %71, %cst_71 {dimension_numbers = #tpu.dot_dimension_numbers<[1], [0], [0], [1], [0, 0, 1, 1], [], []>} : vector<8x10xf32>, vector<10x16xf32>, vector<8x16xf32> -> vector<8x16xf32>
    %c0_72 = arith.constant 0 : index
    %c0_73 = arith.constant 0 : index
    %217 = vector.load %arg8[%c0_72, %c0_73] : memref<8x16xf32, #tpu.memory_space<vmem>>, vector<8x16xf32>
    %218 = arith.mulf %217, %216 : vector<8x16xf32>
    %c0_74 = arith.constant 0 : index
    %c0_75 = arith.constant 0 : index
    %219 = vector.load %arg8[%c0_74, %c0_75] : memref<8x16xf32, #tpu.memory_space<vmem>>, vector<8x16xf32>
    tpu.vector_store %arg8[%c0_74, %c0_75], %218 {strides = array<i32>} : memref<8x16xf32, #tpu.memory_space<vmem>>, vector<8x16xf32>,
    return
  }
  func.func @transform_0(%arg0: i32, %arg1: i32) -> (i32, i32) {
    %c0_i32 = arith.constant 0 : i32
    %c0_i32_0 = arith.constant 0 : i32
    %c0_i32_1 = arith.constant 0 : i32
    return %c0_i32, %c0_i32_0 : i32, i32
  }
  func.func @transform_1(%arg0: i32, %arg1: i32) -> (i32, i32) {
    %c0_i32 = arith.constant 0 : i32
    %c0_i32_0 = arith.constant 0 : i32
    %c0_i32_1 = arith.constant 0 : i32
    return %c0_i32, %c0_i32_0 : i32, i32
  }
  func.func @transform_2(%arg0: i32, %arg1: i32) -> (i32, i32) {
    %c0_i32 = arith.constant 0 : i32
    %c0_i32_0 = arith.constant 0 : i32
    return %arg0, %c0_i32 : i32, i32
  }
  func.func @transform_3(%arg0: i32, %arg1: i32) -> (i32, i32) {
    %c0_i32 = arith.constant 0 : i32
    %c0_i32_0 = arith.constant 0 : i32
    return %c0_i32, %arg1 : i32, i32
  }
  func.func @transform_4(%arg0: i32, %arg1: i32) -> (i32, i32) {
    %c0_i32 = arith.constant 0 : i32
    %c0_i32_0 = arith.constant 0 : i32
    %c0_i32_1 = arith.constant 0 : i32
    return %c0_i32, %c0_i32_0 : i32, i32
  }
  func.func @transform_5(%arg0: i32, %arg1: i32) -> (i32, i32) {
    %c0_i32 = arith.constant 0 : i32
    %c0_i32_0 = arith.constant 0 : i32
    %c0_i32_1 = arith.constant 0 : i32
    return %c0_i32, %c0_i32_0 : i32, i32
  }
  func.func @transform_6(%arg0: i32, %arg1: i32) -> (i32, i32) {
    %c0_i32 = arith.constant 0 : i32
    return %arg0, %arg1 : i32, i32
  }
}

</mosaic_0001>

<bundles_post_ra>
// kernel: tpu_custom_call.1
= control target key start
LH: loop header
LB: loop body
LE: loop exit
PB: predicated region body
PF: predicated region fallthrough
CT: control target
= control target key end

     0   :  { %12 = vsyncpa [#allocation5], 0  ;;  %s1387_s0 = inlined_call_operand.vmem [shape: f32[1,10], index: 0, kind: input, shape index: {}]   ;;  %s1388_s1 = inlined_call_operand.<no memory space> [shape: f32[1,1], index: 1, kind: input, shape index: {}]   ;;  %s1389_s2 = inlined_call_operand.vmem [shape: f32[8,2], index: 2, kind: input, shape index: {}]   ;;  %s1390_s3 = inlined_call_operand.vmem [shape: f32[2,16], index: 3, kind: input, shape index: {}]   ;;  %s1391_s4 = inlined_call_operand.vmem [shape: f32[25,10], index: 4, kind: input, shape index: {}]   ;;  %s1392_s5 = inlined_call_operand.vmem [shape: f32[10,25], index: 5, kind: input, shape index: {}]   ;;  %s1393_s6 = inlined_call_operand.hbm [shape: f32[8,16], index: 6, kind: output, shape index: {}]  }
   0x1   :  { %13 = vsyncpa [#allocation4], 0  ;;  %s20_s23 = sshll.u32 %s1387_s0, 4  ;;  %s21_s23 = int_to_ptr.vmem [resolvable:$true] %s20_s23 }
   0x2   :  { %s1118_s24 = scalar_lea.vmem %s21_s23, 16  ;;  %p1123_p1 = scmp.lt.s32.totalorder %s21_s23, %s21_s23 }
   0x3   :  { %p1119_p0 = scmp.ne.s32.totalorder %s21_s23, %s1118_s24  ;;  %p1124_p2 = scmp.lt.s32.totalorder %s1118_s24, %s1118_s24 }
   0x5   :  { %p1125_p3 = por %p1124_p2, %p1123_p1 }
   0x7   :  { %p1126_p4 = pnand %p1125_p3, %p1119_p0 }
   0x9   :  { %1129 = shalt.err (!%p1126_p4)
}
   0xa   :  { %s1154_s25 = smov [#allocation3]  }
   0xb   :  { %23 = dma.vmem_to_smem %s21_s23, 16, %s1154_s25, [#allocation5]  }
   0xc   :  { %1150 = dma.done.wait [#allocation5], 16  }
   0xd   :  { %1151 = vsyncadd [#allocation5], 4294967280 }
   0xe   :  { %37 = sfence }
   0xf   :  { %v40_v0 = vld [vmem:[%s1391_s4] sm:$0xff]  ;;  %vm54_vm0 = vcmask 1041408   ;;  %vm50_vm1 = vcmask 15360   ;;  %v1155_v2 = vmov 0.0   ;;  %vm1156_vm2 = vmmov 0   ;;  %v41_v4 = vld [vmem:[%s1391_s4 + $0x8] sm:$0xff] }
  0x10   :  { %v1216_v1 = vld [vmem:[%s1389_s2] sm:$0xff]  ;;  %992 = vmatprep.subr.mxu0 %v1155_v2  ;;  %994 = vmatprep.mubr.msk.f32.mxu0 %vm1156_vm2, %v1155_v2  ;;  %v135_v3 = vrot.slane %v40_v0, 3  ;;  %vm134_vm3 = vcmask 1044480   ;;  %v136_v5 = vrot.slane %v41_v4, 3  ;;  %v1250_v9 = vld [vmem:[%s1392_s5 + $0x8] sm:$0x3]  ;;  %v46_v11 = vlaneseq }
  0x11   :  { %993 = vmatpush3.msk.msra.mxu0 %vm54_vm0, %v40_v0  ;;  %997 = vmatprep.subr.mxu1 %v1155_v2  ;;  %v1238_v7 = vld [vmem:[%s1390_s3] sm:$0x3]  ;;  %v1157_v10 = vmov 2   ;;  %s1158_s12 = smov 125   ;;  %vm139_vm4 = vcmask 80896   ;;  %v42_v19 = vld [vmem:[%s1391_s4 + $0x10] sm:$0xff] }
  0x12   :  { %995 = vmatmul.mubr.msk.f32.vlgmr.msra.gmra.mxu0 %vm50_vm1, %v1216_v1  ;;  %1001 = vmatprep.mubr.msk.f32.mxu1 %vm1156_vm2, %v1155_v2  ;;  %v137_v6 = vsel %vm134_vm3, %v135_v3, %v136_v5  ;;  %v1245_v8 = vld [vmem:[%s1392_s5] sm:$0xff]  ;;  %v1257_v12 = vshrl.u32 %v46_v11, 7  ;;  %v221_v20 = vrot.slane %v41_v4, 6  ;;  %v222_v21 = vrot.slane %v42_v19, 6  ;;  %s1160_s13 = smov 114   ;;  %s959_s17 = sld [smem:[#allocation3 + $0x1]] }
  0x13   :  { %1004 = vmatprep.subr.mxu0 %v1155_v2  ;;  %1008 = vmatprep.mubr.msk.f32.mxu0 %vm1156_vm2, %v1155_v2  ;;  %v1159_v23 = vmov 13   ;;  %v947_v42 = vld [vmem:[%s1391_s4 + $0x18] ss:$0 sm:$0xff]  ;;  %v1161_v55 = vmov 24   ;;  %v1162_v61 = vmov 0   ;;  %v1163_v62 = vmov 1  }
  0x14   :  { %998 = vmatpush3.msk.msra.mxu1 %vm54_vm0, %v136_v5  ;;  %1055 = vset.pattern.permute.xlu0 %v1157_v10  ;;  %v48_v13 = vsub.s32 2, %v1257_v12  ;;  %v223_v22 = vsel %vm54_vm0, %v221_v20, %v222_v21  ;;  %v131_v24 = vsub.s32 5, %v1257_v12  ;;  %vm604_vm5 = vcmask 123904   ;;  %s965_s18 = sld [smem:[#allocation3 + $0x7]]  ;;  %s1171_s26 = smov [#allocation6]  }
  0x15   :  { %999 = vmatprep.subr.mxu1 %v1155_v2  ;;  %420 = vrot.lane.b32.xlu1 %v1245_v8, %s1158_s12  ;;  %vm602_vm6 = vcmask 130048   ;;  %s960_s19 = sld [smem:[#allocation3 + $0x2]]  ;;  %s934_s27 = sshll.u32 %s1171_s26, 4  ;;  %s935_s27 = int_to_ptr.vmem [resolvable:$true] %s934_s27 }
  0x16   :  { %1000 = vmatpush3.msra.mxu1 %v137_v6  ;;  %325 = vperm.xlu0 %1055, %v1250_v9   ;;  %v49_v14 = vrot.slane %v40_v0, %v48_v13  ;;  %v132_v25 = vrot.slane %v41_v4, %v131_v24  ;;  %s966_s20 = sld [smem:[#allocation3 + $0x8]]  ;;  %s1130_s28 = scalar_lea.vmem %s935_s27, 128 }
  0x17   :  { %1011 = vmatprep.subr.msk.mxu1 %vm54_vm0, %v1238_v7  ;;  %1005 = vmatpush3.msk.msra.mxu0 %vm54_vm0, %v222_v21  ;;  %s967_s21 = sld [smem:[#allocation3 + $0x9]]  ;;  %p1131_p5 = scmp.ne.s32.totalorder %s935_s27, %s1130_s28 }
  0x18   :  { %1006 = vmatprep.subr.mxu0 %v1155_v2  ;;  %1057 = vset.pattern.permute.xlu1 %v1159_v23  ;;  %s961_s22 = sld [smem:[#allocation3 + $0x3]]  ;;  %p1135_p6 = scmp.lt.s32.totalorder %s935_s27, %s935_s27 }
  0x19   :  { %422 = vrot.lane.b32.xlu1 %v1250_v9, %s1158_s12  ;;  %1007 = vmatpush3.msra.mxu0 %v223_v22  ;;  %s962_s23 = sld [smem:[#allocation3 + $0x4]]  ;;  %p1136_p7 = scmp.lt.s32.totalorder %s1130_s28, %s1130_s28 }
  0x1a   :  { %320 = vperm.xlu0 %1055, %v1245_v8   ;;  %s963_s24 = sld [smem:[#allocation3 + $0x5]] }
  0x1b   :  { %s964_s25 = sld [smem:[#allocation3 + $0x6]]  ;;  %p1137_p8 = por %p1136_p7, %p1135_p6 }
  0x1d   :  { %413 = vperm.xlu1 %1057, %v1245_v8   ;;  %p1138_p9 = pnand %p1137_p8, %p1131_p5 }
  0x1e   :  { %1056 = vset.pattern.permute.xlu0 %v1159_v23 }
  0x1f   :  { %417 = vperm.xlu0 %1056, %v1250_v9  }
  0x21   :  { %516 = vrot.lane.b32.xlu1 %v1245_v8, %s1160_s13 }
  0x22   :  { %1059 = vset.pattern.permute.xlu1 %v1161_v55 }
  0x23   :  { %518 = vrot.lane.b32.xlu0 %v1250_v9, %s1160_s13 }
  0x24   :  { %1058 = vset.pattern.permute.xlu0 %v1161_v55 }
  0x87   :  { %v421_v36 = vpop.permute.xlu1 %420 }
  0x8b   :  { %v423_v39 = vpop.permute.xlu1 %422 }
  0x91   :  { %v326_v26 = vpop.permute.xlu0 %325 }
  0x95   :  { %v321_v31 = vpop.permute.xlu0 %320 }
  0x98   :  { %v414_v40 = vpop.permute.xlu1 %413 }
  0x9a   :  { %v418_v47 = vpop.permute.xlu0 %417 }
  0x9c   :  { %v517_v41 = vpop.permute.xlu1 %516 }
  0x9e   :  { %v519_v54 = vpop.permute.xlu0 %518 }
  0xd2   :  { %v124_v15 = vpop.f32.mrf.mxu0 }
  0xd3   :  { %v125_v16 = vadd.f32 %v124_v15, %v49_v14 }
  0xd4   :  { %v996_v17 = vpop.f32.mrf.mxu0 }
  0xd5   :  { %1072 = vtanh.f32 %v125_v16 }
  0xe2   :  { %v1073_v18 = vpop.eup %1072 }
  0xe3   :  { %1002 = vmatmul.mubr.msk.f32.vlgmr.msra.gmra.mxu1 %vm139_vm4, %v1073_v18 }
  0xe4   :  { %1012 = vmatpush3.msk.msra.mxu1 %vm54_vm0, %v1238_v7  ;;  %1013 = vmatprep.mubr.msk.f32.mxu1 %vm50_vm1, %v1245_v8 }
  0xe7   :  { %1014 = vmatmul.mubr.msk.f32.vlgmr.msra.gmra.mxu1 %vm50_vm1, %v1250_v9 }
  0xe8   :  { %1027 = vmatprep.mubr.msk.f32.mxu1 %vm139_vm4, %v517_v41 }
 0x1a3   :  { %v211_v27 = vpop.f32.mrf.mxu1 }
 0x1a4   :  { %v212_v28 = vadd.f32 %v211_v27, %v132_v25 }
 0x1a5   :  { %v1003_v29 = vpop.f32.mrf.mxu1 }
 0x1a6   :  { %1074 = vtanh.f32 %v212_v28 }
 0x1a7   :  { %v1015_v30 = vpop.f32.mrf.mxu1 }
 0x1a8   :  { %v407_v32 = vadd.f32 %v1015_v30, %v326_v26 }
 0x1a9   :  { %v401_v33 = vpop.f32.mrf.mxu1 }
 0x1aa   :  { %1076 = vtanh.f32 %v407_v32  ;;  %v402_v34 = vadd.f32 %v401_v33, %v321_v31 }
 0x1ac   :  { %1078 = vtanh.f32 %v402_v34 }
 0x1b3   :  { %v1075_v35 = vpop.eup %1074 }
 0x1b4   :  { %1009 = vmatmul.mubr.msk.f32.vlgmr.msra.gmra.mxu0 %vm139_vm4, %v1075_v35 }
 0x1b5   :  { %1020 = vmatprep.mubr.msk.f32.mxu0 %vm139_vm4, %v421_v36 }
 0x1b7   :  { %v1077_v37 = vpop.eup %1076 }
 0x1b8   :  { %1016 = vmatprep.subr.msk.mxu0 %vm54_vm0, %v1077_v37 }
 0x1b9   :  { %v1079_v38 = vpop.eup %1078  ;;  %1017 = vmatpush3.msk.msra.mxu0 %vm54_vm0, %v1077_v37 }
 0x1ba   :  { %1018 = vmatprep.subr.mxu0 %v1079_v38 }
 0x1bb   :  { %1019 = vmatpush3.msra.mxu0 %v1079_v38 }
 0x1bc   :  { %1021 = vmatmul.mubr.msk.f32.vlgmr.msra.gmra.mxu0 %vm139_vm4, %v423_v39  ;;  %1030 = vmatprep.subr.mxu0 %v1155_v2 }
 0x1bd   :  { %1034 = vmatprep.mubr.msk.f32.mxu0 %vm1156_vm2, %v1155_v2 }
 0x274   :  { %v296_v43 = vpop.f32.mrf.mxu0 }
 0x275   :  { %v297_v44 = vadd.f32 %v947_v42, %v296_v43 }
 0x276   :  { %v1010_v45 = vpop.f32.mrf.mxu0 }
 0x277   :  { %v300_v46 = vsel %vm139_vm4, %v297_v44, -inf }
 0x278   :  { %301 = vmax.xlane.f32.xlu1 %v300_v46 }
 0x27c   :  { %v1022_v48 = vpop.f32.mrf.mxu0 }
 0x27d   :  { %v503_v49 = vadd.f32 %v1022_v48, %v418_v47 }
 0x27e   :  { %v497_v50 = vpop.f32.mrf.mxu0 }
 0x27f   :  { %1080 = vtanh.f32 %v503_v49  ;;  %v498_v51 = vadd.f32 %v497_v50, %v414_v40 }
 0x281   :  { %1082 = vtanh.f32 %v498_v51 }
 0x289   :  { %513 = vperm.xlu1 %1059, %v1250_v9  }
 0x28c   :  { %v1081_v52 = vpop.eup %1080 }
 0x28d   :  { %1023 = vmatprep.subr.msk.mxu1 %vm54_vm0, %v1081_v52  ;;  %1062 = vset.pattern.permute.xlu1 %v1162_v61 }
 0x28e   :  { %v1083_v53 = vpop.eup %1082  ;;  %1024 = vmatpush3.msk.msra.mxu1 %vm54_vm0, %v1081_v52 }
 0x28f   :  { %1025 = vmatprep.subr.mxu1 %v1083_v53 }
 0x290   :  { %1026 = vmatpush3.msra.mxu1 %v1083_v53 }
 0x291   :  { %1028 = vmatmul.mubr.msk.f32.vlgmr.msra.gmra.mxu1 %vm139_vm4, %v519_v54 }
 0x301   :  { %v302_v56 = vpop.xlane.xlu1 %301 }
 0x302   :  { %v303_v57 = vsub.f32 %v297_v44, %v302_v56 }
 0x304   :  { %v304_v58 = vmul.f32 1.442695, %v303_v57  ;;  %v1315_v57 = vsub.s32 0, %v1257_v12 }
 0x305   :  { %v514_v3 = vpop.permute.xlu1 %513 }
 0x306   :  { %1084 = vpow2.f32 %v304_v58  ;;  %v1318_v58 = vsub.s32 1, %v1257_v12 }
 0x313   :  { %v1085_v59 = vpop.eup %1084 }
 0x314   :  { %v306_v60 = vsel %vm139_vm4, %v1085_v59, 0.0 }
 0x315   :  { %307 = vadd.xlane.f32.xlu0 %v306_v60 }
 0x32b   :  { %509 = vperm.xlu0 %1058, %v1245_v8  }
 0x32f   :  { %1060 = vset.pattern.permute.xlu0 %v1162_v61 }
 0x330   :  { %647 = vperm.xlu0 %1060, %v1216_v1  }
 0x334   :  { %1061 = vset.pattern.permute.xlu0 %v1163_v62 }
 0x335   :  { %657 = vperm.xlu0 %1061, %v1216_v1  }
 0x351   :  { %v1029_v0 = vpop.f32.mrf.mxu1 }
 0x352   :  { %v599_v4 = vadd.f32 %v1029_v0, %v514_v3 }
 0x353   :  { %v593_v5 = vpop.f32.mrf.mxu1 }
 0x354   :  { %v605_v8 = vsel %vm604_vm5, %v599_v4, -inf }
 0x39e   :  { %v308_v63 = vpop.xlane.xlu0 %307 }
 0x39f   :  { %1086 = vrcp.f32 %v308_v63  ;;  %v847_v63 = vstv %s1388_s1  ;;  %s667_s1 = sld [smem:[#allocation3]] }
 0x3a6   :  { %v510_v6 = vpop.permute.xlu0 %509 }
 0x3a7   :  { %v594_v9 = vadd.f32 %v593_v5, %v510_v6  ;;  %v1166_v5 = vmov 5   ;;  %v1167_v6 = vmov 7  }
 0x3a9   :  { %v603_v11 = vsel %vm602_vm6, %v594_v9, -inf }
 0x3aa   :  { %v606_v14 = vmax.f32 %v603_v11, %v605_v8  ;;  %v1168_v8 = vmov 6   ;;  %v1170_v11 = vmov 9  }
 0x3ac   :  { %v1087_v15 = vpop.eup %1086  ;;  %v607_v16 = vrot.slane %v606_v14, 4 }
 0x3ad   :  { %v311_v17 = vmul.f32 %v1087_v15, %v1085_v59  ;;  %v663_v15 = vrot.slane %v1238_v7, %v1318_v58 }
 0x3ae   :  { %v608_v18 = vmax.f32 %v606_v14, %v607_v16  ;;  %v653_v14 = vrot.slane %v1238_v7, %v1315_v57 }
 0x3af   :  { %v312_v1 = vmul.f32 %v311_v17, %v311_v17 }
 0x3b0   :  { %v609_v19 = vrot.slane %v608_v18, 2 }
 0x3b1   :  { %v313_v20 = vsel %vm139_vm4, %v312_v1, 0.0 }
 0x3b2   :  { %314 = vadd.xlane.f32.xlu1 %v313_v20  ;;  %v610_v21 = vmax.f32 %v608_v18, %v609_v19 }
 0x3b4   :  { %v611_v22 = vrot.slane %v610_v21, 1 }
 0x3b6   :  { %v612_v23 = vmax.f32 %v610_v21, %v611_v22  ;;  %v668_v21 = vstv %s667_s1 }
 0x3b8   :  { %v613_v25 = vsub.f32 %v594_v9, %v612_v23  ;;  %v614_v26 = vsub.f32 %v599_v4, %v612_v23  ;;  %v1165_v4 = vmov 4   ;;  %v1169_v9 = vmov 8  }
 0x3ba   :  { %v615_v27 = vmul.f32 1.442695, %v613_v25  ;;  %v617_v28 = vmul.f32 1.442695, %v614_v26  ;;  %v686_v25 = vstv %s959_s17 }
 0x3bc   :  { %1088 = vpow2.f32 %v615_v27  ;;  %v794_v27 = vstv %s965_s18 }
 0x3bd   :  { %1090 = vpow2.f32 %v617_v28  ;;  %v704_v28 = vstv %s960_s19 }
 0x3c9   :  { %v1089_v29 = vpop.eup %1088 }
 0x3ca   :  { %v1091_v30 = vpop.eup %1090  ;;  %v619_v31 = vsel %vm602_vm6, %v1089_v29, 0.0 }
 0x3cb   :  { %v620_v32 = vsel %vm604_vm5, %v1091_v30, 0.0 }
 0x3cc   :  { %v621_v33 = vadd.f32 %v620_v32, %v619_v31 }
 0x3ce   :  { %v622_v34 = vrot.slane %v621_v33, 4 }
 0x3d0   :  { %v623_v35 = vadd.f32 %v622_v34, %v621_v33 }
 0x3d2   :  { %v624_v36 = vrot.slane %v623_v35, 2 }
 0x3d4   :  { %v625_v37 = vadd.f32 %v624_v36, %v623_v35 }
 0x3d6   :  { %v626_v38 = vrot.slane %v625_v37, 1 }
 0x3d8   :  { %v627_v39 = vadd.f32 %v626_v38, %v625_v37 }
 0x3da   :  { %1092 = vrcp.f32 %v627_v39 }
 0x3e7   :  { %v1093_v40 = vpop.eup %1092 }
 0x3e8   :  { %v630_v41 = vmul.f32 %v1093_v40, %v1089_v29  ;;  %v631_v42 = vmul.f32 %v1093_v40, %v1091_v30  ;;  %v812_v30 = vstv %s966_s20 }
 0x3ea   :  { %v632_v43 = vmul.f32 %v630_v41, %v630_v41  ;;  %v633_v44 = vmul.f32 %v631_v42, %v631_v42 }
 0x3ec   :  { %v634_v45 = vsel %vm602_vm6, %v632_v43, 0.0  ;;  %v635_v46 = vsel %vm604_vm5, %v633_v44, 0.0 }
 0x3ed   :  { %v636_v47 = vadd.f32 %v635_v46, %v634_v45  ;;  %v722_v46 = vstv %s961_s22 }
 0x3ef   :  { %v637_v48 = vrot.slane %v636_v47, 4 }
 0x3f1   :  { %v638_v49 = vadd.f32 %v637_v48, %v636_v47 }
 0x3f3   :  { %v639_v50 = vrot.slane %v638_v49, 2 }
 0x3f5   :  { %v640_v51 = vadd.f32 %v639_v50, %v638_v49 }
 0x3f7   :  { %v641_v52 = vrot.slane %v640_v51, 1 }
 0x3f9   :  { %v642_v53 = vadd.f32 %v641_v52, %v640_v51 }
 0x3fb   :  { %1094 = vrsqrt.f32 %v642_v53  ;;  %v804_v53 = vsub.s32 7, %v1257_v12 }
 0x408   :  { %v1095_v54 = vpop.eup %1094 }
 0x409   :  { %v1310_v55 = vmul.f32 %v1095_v54, %v630_v41  ;;  %v1312_v56 = vmul.f32 %v1095_v54, %v631_v42  ;;  %v830_v41 = vstv %s967_s21 }
 0x40b   :  { %1031 = vmatpush3.msk.msra.mxu0 %vm54_vm0, %v1312_v56  ;;  %v823_v59 = vrot.slane %v1312_v56, %v1315_v57  ;;  %v841_v60 = vrot.slane %v1312_v56, %v1318_v58  ;;  %v680_v31 = vrot.slane %v1310_v55, %v1315_v57  ;;  %v697_v42 = vrot.slane %v1310_v55, %v1318_v58 }
 0x40c   :  { %1032 = vmatprep.subr.mxu0 %v1155_v2  ;;  %v1164_v2 = vmov 3   ;;  %v776_v56 = vstv %s964_s25 }
 0x40d   :  { %1033 = vmatpush3.msra.mxu0 %v1310_v55 }
 0x43b   :  { %v315_v61 = vpop.xlane.xlu1 %314 }
 0x43c   :  { %1096 = vrsqrt.f32 %v315_v61 }
 0x449   :  { %v1097_v62 = vpop.eup %1096 }
 0x44a   :  { %v317_v0 = vmul.f32 %v1097_v62, %v311_v17 }
 0x44c   :  { %691 = vperm.xlu0 %1061, %v317_v0   ;;  %674 = vperm.xlu1 %1062, %v317_v0   ;;  %v848_v3 = vmul.f32 %v847_v63, %v317_v0 }
 0x44e   :  { %1035 = vmatmul.mubr.msk.f32.vlgmr.msra.gmra.mxu0 %vm139_vm4, %v848_v3  ;;  %v805_v3 = vrot.slane %v1310_v55, %v804_v53 }
 0x450   :  { %1063 = vset.pattern.permute.xlu0 %v1157_v10  ;;  %1064 = vset.pattern.permute.xlu1 %v1164_v2  ;;  %v648_v10 = vpop.permute.xlu0 %647  ;;  %v715_v2 = vrot.slane %v1310_v55, %v48_v13 }
 0x451   :  { %709 = vperm.xlu0 %1063, %v317_v0   ;;  %727 = vperm.xlu1 %1064, %v317_v0   ;;  %v654_v17 = vsub.f32 %v648_v10, %v653_v14 }
 0x453   :  { %v655_v1 = vmul.f32 %v654_v17, %v654_v17 }
 0x454   :  { %v658_v16 = vpop.permute.xlu0 %657 }
 0x455   :  { %1065 = vset.pattern.permute.xlu0 %v1165_v4  ;;  %1066 = vset.pattern.permute.xlu1 %v1166_v5  ;;  %v664_v18 = vsub.f32 %v658_v16, %v663_v15 }
 0x456   :  { %745 = vperm.xlu0 %1065, %v317_v0   ;;  %763 = vperm.xlu1 %1066, %v317_v0  }
 0x457   :  { %v665_v19 = vmul.f32 %v664_v18, %v664_v18  ;;  %v732_v18 = vsub.s32 3, %v1257_v12 }
 0x459   :  { %v1337_v20 = vadd.f32 %v665_v19, %v655_v1 }
 0x45a   :  { %1068 = vset.pattern.permute.xlu0 %v1167_v6  ;;  %1067 = vset.pattern.permute.xlu1 %v1168_v8  ;;  %v740_v6 = vstv %s962_s23 }
 0x45b   :  { %799 = vperm.xlu0 %1068, %v317_v0   ;;  %781 = vperm.xlu1 %1067, %v317_v0   ;;  %v669_v22 = vmul.f32 %v668_v21, %v1337_v20  ;;  %v687_v26 = vmul.f32 %v686_v25, %v1337_v20  ;;  %v795_v29 = vmul.f32 %v794_v27, %v1337_v20 }
 0x45c   :  { %v705_v32 = vmul.f32 %v704_v28, %v1337_v20  ;;  %v813_v37 = vmul.f32 %v812_v30, %v1337_v20  ;;  %v831_v47 = vmul.f32 %v830_v41, %v1337_v20  ;;  %v723_v49 = vmul.f32 %v722_v46, %v1337_v20 }
 0x45d   :  { %v670_v23 = vmul.f32 1.442695, %v669_v22  ;;  %v688_v7 = vmul.f32 1.442695, %v687_v26  ;;  %v796_v35 = vmul.f32 1.442695, %v795_v29  ;;  %v741_v14 = vmul.f32 %v740_v6, %v1337_v20 }
 0x45e   :  { %v706_v40 = vmul.f32 1.442695, %v705_v32  ;;  %v814_v45 = vmul.f32 1.442695, %v813_v37  ;;  %v832_v54 = vmul.f32 1.442695, %v831_v47  ;;  %v733_v25 = vrot.slane %v1310_v55, %v732_v18 }
 0x45f   :  { %1069 = vset.pattern.permute.xlu1 %v1169_v9  ;;  %1071 = vset.pattern.permute.xlu0 %v1170_v11  ;;  %1098 = vpow2.f32 %v670_v23  ;;  %v742_v22 = vmul.f32 1.442695, %v741_v14  ;;  %v750_v32 = vsub.s32 4, %v1257_v12  ;;  %v786_v46 = vsub.s32 6, %v1257_v12 }
 0x460   :  { %817 = vperm.xlu1 %1069, %v317_v0   ;;  %1100 = vpow2.f32 %v688_v7  ;;  %v758_v7 = vstv %s963_s24 }
 0x461   :  { %1102 = vpow2.f32 %v796_v35 }
 0x462   :  { %1104 = vpow2.f32 %v706_v40 }
 0x463   :  { %1106 = vpow2.f32 %v814_v45 }
 0x464   :  { %1070 = vset.pattern.permute.xlu1 %v1170_v11  ;;  %1108 = vpow2.f32 %v832_v54 }
 0x465   :  { %835 = vperm.xlu1 %1070, %v317_v0   ;;  %v724_v0 = vmul.f32 1.442695, %v723_v49 }
 0x467   :  { %1110 = vpow2.f32 %v724_v0 }
 0x468   :  { %1112 = vpow2.f32 %v742_v22 }
 0x46c   :  { %v1099_v38 = vpop.eup %1098 }
 0x46d   :  { %v1101_v50 = vpop.eup %1100 }
 0x46e   :  { %v1103_v9 = vpop.eup %1102 }
 0x46f   :  { %v1105_v15 = vpop.eup %1104 }
 0x470   :  { %v1107_v1 = vpop.eup %1106 }
 0x471   :  { %v1109_v28 = vpop.eup %1108 }
 0x474   :  { %v1111_v30 = vpop.eup %1110 }
 0x475   :  { %v1113_v37 = vpop.eup %1112 }
 0x4c7   :  { %v692_v33 = vpop.permute.xlu0 %691  ;;  %v675_v34 = vpop.permute.xlu1 %674 }
 0x4c8   :  { %v681_v36 = vmul.f32 %v680_v31, %v675_v34  ;;  %v698_v48 = vmul.f32 %v697_v42, %v692_v33  ;;  %v769_v42 = vrot.slane %v1310_v55, %v131_v24 }
 0x4ca   :  { %v682_v39 = vmul.f32 %v1099_v38, %v681_v36  ;;  %v699_v61 = vmul.f32 %v1101_v50, %v698_v48  ;;  %v751_v36 = vrot.slane %v1310_v55, %v750_v32 }
 0x4cc   :  { %683 = vst.msk [vmem:[#allocation6] sm:$0xff] %vm602_vm6, %v682_v39  ;;  %v710_v43 = vpop.permute.xlu0 %709  ;;  %v728_v44 = vpop.permute.xlu1 %727 }
 0x4cd   :  { %v716_v11 = vmul.f32 %v715_v2, %v710_v43  ;;  %v734_v29 = vmul.f32 %v733_v25, %v728_v44 }
 0x4cf   :  { %v717_v17 = vmul.f32 %v1105_v15, %v716_v11  ;;  %v735_v31 = vmul.f32 %v1111_v30, %v734_v29 }
 0x4d1   :  { %v746_v51 = vpop.permute.xlu0 %745  ;;  %v764_v52 = vpop.permute.xlu1 %763 }
 0x4d2   :  { %v752_v58 = vmul.f32 %v751_v36, %v746_v51  ;;  %v770_v43 = vmul.f32 %v769_v42, %v764_v52 }
 0x4d3   :  { %v684_v62 = vld [vmem:[#allocation6] sm:$0xff] }
 0x4d4   :  { %v700_v63 = vadd.f32 %v699_v61, %v684_v62  ;;  %v753_v38 = vmul.f32 %v1113_v37, %v752_v58 }
 0x4d6   :  { %701 = vst.msk [vmem:[#allocation6] sm:$0xff] %vm602_vm6, %v700_v63  ;;  %v800_v4 = vpop.permute.xlu0 %799  ;;  %v782_v5 = vpop.permute.xlu1 %781 }
 0x4d7   :  { %v806_v8 = vmul.f32 %v805_v3, %v800_v4 }
 0x4d9   :  { %v807_v10 = vmul.f32 %v1103_v9, %v806_v8 }
 0x4db   :  { %v818_v16 = vpop.permute.xlu1 %817 }
 0x4dc   :  { %v824_v13 = vmul.f32 %v823_v59, %v818_v16  ;;  %v759_v59 = vmul.f32 %v758_v7, %v1337_v20 }
 0x4dd   :  { %v702_v19 = vld [vmem:[#allocation6] sm:$0xff] }
 0x4de   :  { %v718_v21 = vadd.f32 %v717_v17, %v702_v19  ;;  %v825_v23 = vmul.f32 %v1107_v1, %v824_v13  ;;  %v760_v35 = vmul.f32 1.442695, %v759_v59 }
 0x4e0   :  { %719 = vst.msk [vmem:[#allocation6] sm:$0xff] %vm602_vm6, %v718_v21  ;;  %v836_v26 = vpop.permute.xlu1 %835  ;;  %1114 = vpow2.f32 %v760_v35 }
 0x4e1   :  { %v842_v27 = vmul.f32 %v841_v60, %v836_v26  ;;  %v777_v60 = vmul.f32 %v776_v56, %v1337_v20  ;;  %v787_v20 = vrot.slane %v1310_v55, %v786_v46 }
 0x4e3   :  { %v843_v57 = vmul.f32 %v1109_v28, %v842_v27  ;;  %v778_v41 = vmul.f32 1.442695, %v777_v60  ;;  %v788_v49 = vmul.f32 %v787_v20, %v782_v5 }
 0x4e5   :  { %1116 = vpow2.f32 %v778_v41 }
 0x4e7   :  { %v720_v33 = vld [vmem:[#allocation6] sm:$0xff] }
 0x4e8   :  { %v736_v34 = vadd.f32 %v735_v31, %v720_v33 }
 0x4ea   :  { %737 = vst.msk [vmem:[#allocation6] sm:$0xff] %vm602_vm6, %v736_v34 }
 0x4ed   :  { %v1115_v44 = vpop.eup %1114 }
 0x4ee   :  { %v771_v45 = vmul.f32 %v1115_v44, %v770_v43 }
 0x4f1   :  { %v738_v39 = vld [vmem:[#allocation6] sm:$0xff] }
 0x4f2   :  { %v754_v40 = vadd.f32 %v753_v38, %v738_v39  ;;  %v1117_v50 = vpop.eup %1116 }
 0x4f3   :  { %v789_v51 = vmul.f32 %v1117_v50, %v788_v49 }
 0x4f4   :  { %755 = vst.msk [vmem:[#allocation6] sm:$0xff] %vm602_vm6, %v754_v40 }
 0x4fb   :  { %v756_v47 = vld [vmem:[#allocation6] sm:$0xff] }
 0x4fc   :  { %v772_v48 = vadd.f32 %v771_v45, %v756_v47 }
 0x4fe   :  { %773 = vst.msk [vmem:[#allocation6] sm:$0xff] %vm602_vm6, %v772_v48 }
 0x505   :  { %v774_v53 = vld [vmem:[#allocation6] sm:$0xff] }
 0x506   :  { %v790_v54 = vadd.f32 %v789_v51, %v774_v53 }
 0x508   :  { %791 = vst.msk [vmem:[#allocation6] sm:$0xff] %vm602_vm6, %v790_v54 }
 0x50e   :  { %v921_v24 = vpop.f32.mrf.mxu0 }
 0x50f   :  { %v792_v52 = vld [vmem:[#allocation6] sm:$0xff] }
 0x510   :  { %v808_v61 = vadd.f32 %v807_v10, %v792_v52  ;;  %v1036_v62 = vpop.f32.mrf.mxu0 }
 0x512   :  { %809 = vst.msk [vmem:[#allocation6] sm:$0xff] %vm602_vm6, %v808_v61 }
 0x519   :  { %v810_v12 = vld [vmem:[#allocation6] sm:$0xff] }
 0x51a   :  { %v826_v63 = vadd.f32 %v825_v23, %v810_v12 }
 0x51c   :  { %827 = vst.msk [vmem:[#allocation6] sm:$0xff] %vm602_vm6, %v826_v63 }
 0x523   :  { %v828_v0 = vld [vmem:[#allocation6] sm:$0xff] }
 0x524   :  { %v844_v3 = vadd.f32 %v843_v57, %v828_v0 }
 0x526   :  { %845 = vst.msk [vmem:[#allocation6] sm:$0xff] %vm602_vm6, %v844_v3 }
 0x52d   :  { %v925_v55 = vld [vmem:[#allocation6] sm:$0xff] }
 0x52e   :  { %v926_v2 = vmul.f32 %v925_v55, %v921_v24 }
 0x530   :  { %927 = vst.msk [vmem:[#allocation6] sm:$0xff] %vm602_vm6, %v926_v2 }
 0x531   :  { %1141 = shalt.err (!%p1138_p9)
}
 0x532   :  { %937 = dma.vmem_to_hbm [thread:$0]  %s935_s27, 128, %s1393_s6, [#allocation4]  }
 0x533   :  { %1152 = dma.done.wait [#allocation4], 128  }
 0x534   :  { %1153 = vsyncadd [#allocation4], 4294967168 }
 0x535   :  { %941 = vsyncpa [#allocation4], 1 }
 0x536   :  { %942 = vsyncpa [#allocation5], 1 }

</bundles_post_ra>
